<compile_context>
chip_gen: v5e
topology: v5e:2x2
jax: 0.10.0
libtpu: 0.0.40
codegen_flags: <defaults>
</compile_context>

<pallas_src>
import functools

import jax
import jax.numpy as jnp
from jax import lax
from jax.experimental import pallas as pl
from jax.experimental.pallas import tpu as pltpu

_BN_EPS = 1e-5


# ---------------------------------------------------------------------------
# Fused SSH kernel (one batch element per grid step)
# ---------------------------------------------------------------------------
def _ssh_kernel(xe_ref, mask_ref, wx_ref, wm_ref, w7_ref,
                bx_ref, bm_ref, b7_ref, o_ref, *, Wp, C2, C4, C4P, leaky):
    # xe_ref  : (1, CinP, XW)       zero-padded, flattened, lane-extended input
    # mask_ref: (1, HPWP)           1.0 on interior positions of the padded grid
    # wx_ref  : (C2+C4P, 9*CinP)    [conv3X3 ; conv5X5_1]   (BN scale folded)
    # wm_ref  : (C4P+C4, 9*C4P)     [conv7X7_2 ; conv5X5_2] (BN scale folded)
    # w7_ref  : (C4, 9*C4P)         conv7x7_3               (BN scale folded)
    # b*_ref  : (rows, 1)           folded BN biases, same row order as weights
    # o_ref   : (1, C2+2*C4, HPWP)  output on the padded grid (interior valid)
    HPWP = mask_ref.shape[-1]
    OFF = Wp + 1

    def patches(ext):
        # ext: (C, HPWP + 2*OFF) lane-extended activation.  Returns the
        # (9*C, HPWP) im2col matrix (tap-major rows); every tap is a static
        # lane window, valid at interior padded-grid positions.
        slabs = []
        for dy in range(3):
            for dx in range(3):
                off = dy * Wp + dx
                slabs.append(ext[:, off:off + HPWP])
        return jnp.concatenate(slabs, axis=0)

    def lrelu(v):
        return jnp.where(v >= 0.0, v, v * leaky)

    def extend(v):
        z = jnp.zeros((v.shape[0], OFF), jnp.float32)
        return jnp.concatenate([z, v, z], axis=1)

    mask = mask_ref[...]                                        # (1, HPWP)

    # Stage 1: conv3X3 and conv5X5_1 share the input patches -> one matmul.
    px = patches(xe_ref[0])                                     # (9*CinP, HPWP)
    y1 = lrelu(jnp.dot(wx_ref[...], px,
                       preferred_element_type=jnp.float32) + bx_ref[...])
    y3 = y1[:C2]                                                # conv3X3
    y51 = y1[C2:] * mask                # conv5X5_1, halo zeroed => SAME padding

    # Stage 2: conv7X7_2 and conv5X5_2 share conv5X5_1's patches.
    p51 = patches(extend(y51))                                  # (9*C4P, HPWP)
    y2 = lrelu(jnp.dot(wm_ref[...], p51,
                       preferred_element_type=jnp.float32) + bm_ref[...])
    y72 = y2[:C4P] * mask                                       # conv7X7_2
    y5 = y2[C4P:]                                               # conv5X5_2

    # Stage 3: conv7x7_3 on conv7X7_2.
    p72 = patches(extend(y72))                                  # (9*C4P, HPWP)
    y7 = jnp.dot(w7_ref[...], p72,
                 preferred_element_type=jnp.float32) + b7_ref[...]

    # torch.cat(dim=1) + trailing ReLU: each branch is written straight into
    # its channel slice of the single lane-dense output block.
    o_ref[0, 0:C2, :] = jnp.maximum(y3, 0.0).astype(o_ref.dtype)
    o_ref[0, C2:C2 + C4, :] = jnp.maximum(y5, 0.0).astype(o_ref.dtype)
    o_ref[0, C2 + C4:C2 + 2 * C4, :] = jnp.maximum(y7, 0.0).astype(o_ref.dtype)


# ---------------------------------------------------------------------------
# Host-side parameter packing (BN scale folded into weights)
# ---------------------------------------------------------------------------
def _round_up(x, m):
    return ((x + m - 1) // m) * m


def _fold_wmat(p, cin_pad, cout_pad):
    """HWIO (3,3,Cin,Cout) weight with BN scale folded -> (cout_pad, 9*cin_pad).

    Column order is tap-major / channel-minor, matching the in-kernel patch
    matrix; padded rows/columns are zero so padded channels contribute nothing.
    """
    w = p["w"] * p["scale"][None, None, None, :]
    kh, kw, cin, cout = w.shape
    w = jnp.pad(w, ((0, 0), (0, 0), (0, cin_pad - cin), (0, 0)))
    m = jnp.transpose(w, (3, 0, 1, 2)).reshape(cout, kh * kw * cin_pad)
    m = jnp.pad(m, ((0, cout_pad - cout), (0, 0)))
    return m.astype(jnp.float32)


def _pad_bias(b, n):
    return jnp.pad(b, (0, n - b.shape[0])).astype(jnp.float32)


# ---------------------------------------------------------------------------
# SSH forward (NCHW in, NCHW out, like the PyTorch module)
# ---------------------------------------------------------------------------
def ssh_forward(x_nchw, params, out_channel):
    N, Cin, H, W = x_nchw.shape
    assert out_channel % 4 == 0
    C2, C4 = out_channel // 2, out_channel // 4
    Hp, Wp = H + 2, W + 2
    HPWP = Hp * Wp
    OFF = Wp + 1              # flat-index shift of padded-grid position (1, 1)
    XW = HPWP + 2 * OFF       # extended lane width: every tap is a static slice
    CinP = _round_up(Cin, 8)
    C4P = _round_up(C4, 8)    # intermediate channels padded for sublane tiling
    leaky = 0.1 if out_channel <= 64 else 0.0

    # One-time input prep: SAME zero-pad, channel pad, flatten spatial to the
    # lane axis, zero-extend the lane axis by OFF on both sides.
    xp = jnp.pad(x_nchw.astype(jnp.float32),
                 ((0, 0), (0, CinP - Cin), (1, 1), (1, 1)))
    xe = jnp.pad(xp.reshape(N, CinP, HPWP), ((0, 0), (0, 0), (OFF, OFF)))

    # Packed per-stage weight matrices + bias columns.
    w_x = jnp.concatenate([
        _fold_wmat(params["conv3X3"], CinP, C2),        # rows [0, C2)
        _fold_wmat(params["conv5X5_1"], CinP, C4P),     # rows [C2, C2+C4P)
    ], axis=0)
    b_x = jnp.concatenate([params["conv3X3"]["bias"],
                           _pad_bias(params["conv5X5_1"]["bias"], C4P)])
    w_m = jnp.concatenate([
        _fold_wmat(params["conv7X7_2"], C4P, C4P),      # rows [0, C4P)
        _fold_wmat(params["conv5X5_2"], C4P, C4),       # rows [C4P, C4P+C4)
    ], axis=0)
    b_m = jnp.concatenate([_pad_bias(params["conv7X7_2"]["bias"], C4P),
                           params["conv5X5_2"]["bias"]])
    w_7 = _fold_wmat(params["conv7x7_3"], C4P, C4)
    b_x = b_x.reshape(-1, 1).astype(jnp.float32)
    b_m = b_m.reshape(-1, 1).astype(jnp.float32)
    b_7 = params["conv7x7_3"]["bias"].reshape(-1, 1).astype(jnp.float32)

    # Interior mask over the flattened padded grid (zeroes the halo ring of the
    # VMEM-resident intermediates => SAME zero padding for the chained convs).
    pos = jnp.arange(HPWP, dtype=jnp.int32)
    row, col = pos // Wp, pos % Wp
    mask = (((row >= 1) & (row <= H) & (col >= 1) & (col <= W))
            .astype(jnp.float32).reshape(1, HPWP))

    kernel = functools.partial(_ssh_kernel, Wp=Wp, C2=C2, C4=C4, C4P=C4P,
                               leaky=leaky)

    out_pad = pl.pallas_call(
        kernel,
        out_shape=jax.ShapeDtypeStruct((N, out_channel, HPWP), jnp.float32),
        grid_spec=pltpu.PrefetchScalarGridSpec(
            num_scalar_prefetch=0,
            grid=(N,),
            in_specs=[
                pl.BlockSpec((1, CinP, XW), lambda n: (n, 0, 0)),
                pl.BlockSpec((1, HPWP), lambda n: (0, 0)),
                pl.BlockSpec(w_x.shape, lambda n: (0, 0)),
                pl.BlockSpec(w_m.shape, lambda n: (0, 0)),
                pl.BlockSpec(w_7.shape, lambda n: (0, 0)),
                pl.BlockSpec(b_x.shape, lambda n: (0, 0)),
                pl.BlockSpec(b_m.shape, lambda n: (0, 0)),
                pl.BlockSpec(b_7.shape, lambda n: (0, 0)),
            ],
            out_specs=pl.BlockSpec((1, out_channel, HPWP),
                                   lambda n: (n, 0, 0)),
        ),
        compiler_params=pltpu.CompilerParams(
            dimension_semantics=("parallel",)),
    )(xe, mask, w_x, w_m, w_7, b_x, b_m, b_7)

    # Drop the halo ring -> NCHW (N, out_channel, H, W), matching PyTorch.
    return out_pad.reshape(N, out_channel, Hp, Wp)[:, :, 1:-1, 1:-1]


# ---------------------------------------------------------------------------
# Parameter construction (deterministic, synthetic) and BN folding
# ---------------------------------------------------------------------------
def _init_conv_bn(key, cin, cout):
    kw, kg, kb, km, kv = jax.random.split(key, 5)
    # PyTorch conv weight is OIHW -> convert to HWIO.
    w_oihw = jax.random.normal(kw, (cout, cin, 3, 3), jnp.float32) * 0.1
    w_hwio = jnp.transpose(w_oihw, (2, 3, 1, 0))
    gamma = 1.0 + 0.1 * jax.random.normal(kg, (cout,), jnp.float32)
    beta = 0.1 * jax.random.normal(kb, (cout,), jnp.float32)
    r_mean = 0.1 * jax.random.normal(km, (cout,), jnp.float32)
    r_var = jax.random.uniform(kv, (cout,), jnp.float32, 0.5, 1.5)
    # Eval-mode BN folded to per-channel scale / bias.
    scale = gamma / jnp.sqrt(r_var + _BN_EPS)
    bias = beta - r_mean * scale
    return dict(w=w_hwio, scale=scale, bias=bias)


def init_ssh_params(key, in_channel, out_channel):
    assert out_channel % 4 == 0
    ks = jax.random.split(key, 5)
    return {
        "conv3X3":   _init_conv_bn(ks[0], in_channel, out_channel // 2),
        "conv5X5_1": _init_conv_bn(ks[1], in_channel, out_channel // 4),
        "conv5X5_2": _init_conv_bn(ks[2], out_channel // 4, out_channel // 4),
        "conv7X7_2": _init_conv_bn(ks[3], out_channel // 4, out_channel // 4),
        "conv7x7_3": _init_conv_bn(ks[4], out_channel // 4, out_channel // 4),
    }


# ---------------------------------------------------------------------------
# Pure-JAX reference (for correctness checking)
# ---------------------------------------------------------------------------
def _ref_conv_bn_act(x, p, neg_slope, final_relu):
    y = lax.conv_general_dilated(
        x, p["w"], window_strides=(1, 1), padding="SAME",
        dimension_numbers=("NCHW", "HWIO", "NCHW"))
    y = y * p["scale"][None, :, None, None] + p["bias"][None, :, None, None]
    if neg_slope is not None:
        y = jnp.where(y >= 0.0, y, y * neg_slope)
    if final_relu:
        y = jnp.maximum(y, 0.0)
    return y


def ssh_forward_ref(x_nchw, params, out_channel):
    leaky = 0.1 if out_channel <= 64 else 0.0
    c3 = _ref_conv_bn_act(x_nchw, params["conv3X3"], None, True)
    c51 = _ref_conv_bn_act(x_nchw, params["conv5X5_1"], leaky, False)
    c5 = _ref_conv_bn_act(c51, params["conv5X5_2"], None, True)
    c72 = _ref_conv_bn_act(c51, params["conv7X7_2"], leaky, False)
    c7 = _ref_conv_bn_act(c72, params["conv7x7_3"], None, True)
    return jnp.concatenate([c3, c5, c7], axis=1)


# ---------------------------------------------------------------------------
if __name__ == "__main__":
    N, Cin, H, W = 2, 8, 16, 16
    out_channel = 16

    key = jax.random.PRNGKey(0)
    kx, kp = jax.random.split(key)

    x_nchw = jax.random.normal(kx, (N, Cin, H, W), jnp.float32)
    params = init_ssh_params(kp, Cin, out_channel)

    out = jax.block_until_ready(ssh_forward(x_nchw, params, out_channel))
    assert out.shape == (N, out_channel, H, W), out.shape

    ref = jax.block_until_ready(ssh_forward_ref(x_nchw, params, out_channel))
    assert jnp.allclose(out, ref, atol=2e-4, rtol=2e-4), \
        float(jnp.max(jnp.abs(out - ref)))

    print("KERNEL_OK")
</pallas_src>

<mosaic_0001>
module attributes {stable_mosaic.version = 11 : i64} {
  func.func @_ssh_kernel(%arg0: i32, %arg1: memref<1x8x362xf32, #tpu.memory_space<vmem>>, %arg2: memref<1x324xf32, #tpu.memory_space<vmem>>, %arg3: memref<16x72xf32, #tpu.memory_space<vmem>>, %arg4: memref<12x72xf32, #tpu.memory_space<vmem>>, %arg5: memref<4x72xf32, #tpu.memory_space<vmem>>, %arg6: memref<16x1xf32, #tpu.memory_space<vmem>>, %arg7: memref<12x1xf32, #tpu.memory_space<vmem>>, %arg8: memref<4x1xf32, #tpu.memory_space<vmem>>, %arg9: memref<1x16x324xf32, #tpu.memory_space<vmem>>) attributes {dimension_semantics = [#tpu.dimension_semantics<parallel>], iteration_bounds = array<i64: 2>, scalar_prefetch = 0 : i64, scratch_operands = 0 : i64, tpu.core_type = #tpu.core_type<tc>, window_params = [{transform_indices = @transform_0, window_bounds = array<i64: 1, 8, 362>}, {pipeline_mode = #tpu.pipeline_mode<synchronous>, transform_indices = @transform_1, window_bounds = array<i64: 1, 324>}, {pipeline_mode = #tpu.pipeline_mode<synchronous>, transform_indices = @transform_2, window_bounds = array<i64: 16, 72>}, {pipeline_mode = #tpu.pipeline_mode<synchronous>, transform_indices = @transform_3, window_bounds = array<i64: 12, 72>}, {pipeline_mode = #tpu.pipeline_mode<synchronous>, transform_indices = @transform_4, window_bounds = array<i64: 4, 72>}, {pipeline_mode = #tpu.pipeline_mode<synchronous>, transform_indices = @transform_5, window_bounds = array<i64: 16, 1>}, {pipeline_mode = #tpu.pipeline_mode<synchronous>, transform_indices = @transform_6, window_bounds = array<i64: 12, 1>}, {pipeline_mode = #tpu.pipeline_mode<synchronous>, transform_indices = @transform_7, window_bounds = array<i64: 4, 1>}, {transform_indices = @transform_8, window_bounds = array<i64: 1, 16, 324>}]} {
    %c0 = arith.constant 0 : index
    %c0_0 = arith.constant 0 : index
    %0 = vector.load %arg2[%c0, %c0_0] : memref<1x324xf32, #tpu.memory_space<vmem>>, vector<1x324xf32>
    %c0_1 = arith.constant 0 : index
    %c0_2 = arith.constant 0 : index
    %c0_3 = arith.constant 0 : index
    %1 = vector.load %arg1[%c0_1, %c0_2, %c0_3] : memref<1x8x362xf32, #tpu.memory_space<vmem>>, vector<1x8x362xf32>
    %2 = vector.shape_cast %1 : vector<1x8x362xf32> to vector<8x362xf32>
    %3 = vector.extract_strided_slice %2 {offsets = [0, 0], sizes = [8, 324], strides = [1, 1]} : vector<8x362xf32> to vector<8x324xf32>
    %4 = vector.extract_strided_slice %2 {offsets = [0, 1], sizes = [8, 324], strides = [1, 1]} : vector<8x362xf32> to vector<8x324xf32>
    %5 = vector.extract_strided_slice %2 {offsets = [0, 2], sizes = [8, 324], strides = [1, 1]} : vector<8x362xf32> to vector<8x324xf32>
    %6 = vector.extract_strided_slice %2 {offsets = [0, 18], sizes = [8, 324], strides = [1, 1]} : vector<8x362xf32> to vector<8x324xf32>
    %7 = vector.extract_strided_slice %2 {offsets = [0, 19], sizes = [8, 324], strides = [1, 1]} : vector<8x362xf32> to vector<8x324xf32>
    %8 = vector.extract_strided_slice %2 {offsets = [0, 20], sizes = [8, 324], strides = [1, 1]} : vector<8x362xf32> to vector<8x324xf32>
    %9 = vector.extract_strided_slice %2 {offsets = [0, 36], sizes = [8, 324], strides = [1, 1]} : vector<8x362xf32> to vector<8x324xf32>
    %10 = vector.extract_strided_slice %2 {offsets = [0, 37], sizes = [8, 324], strides = [1, 1]} : vector<8x362xf32> to vector<8x324xf32>
    %11 = vector.extract_strided_slice %2 {offsets = [0, 38], sizes = [8, 324], strides = [1, 1]} : vector<8x362xf32> to vector<8x324xf32>
    %12 = tpu.concatenate %3, %4, %5, %6, %7, %8, %9, %10, %11 in 0 : vector<8x324xf32>, vector<8x324xf32>, vector<8x324xf32>, vector<8x324xf32>, vector<8x324xf32>, vector<8x324xf32>, vector<8x324xf32>, vector<8x324xf32>, vector<8x324xf32> -> vector<72x324xf32>
    %c0_4 = arith.constant 0 : index
    %c0_5 = arith.constant 0 : index
    %13 = vector.load %arg3[%c0_4, %c0_5] : memref<16x72xf32, #tpu.memory_space<vmem>>, vector<16x72xf32>
    %cst = arith.constant dense<0.000000e+00> : vector<16x324xf32>
    %14 = tpu.matmul %13, %12, %cst {dimension_numbers = #tpu.dot_dimension_numbers<[1], [0], [0], [1], [0, 0, 1, 1], [], []>} : vector<16x72xf32>, vector<72x324xf32>, vector<16x324xf32> -> vector<16x324xf32>
    %c0_6 = arith.constant 0 : index
    %c0_7 = arith.constant 0 : index
    %15 = vector.load %arg6[%c0_6, %c0_7] : memref<16x1xf32, #tpu.memory_space<vmem>>, vector<16x1xf32>
    %16 = vector.broadcast %15 : vector<16x1xf32> to vector<16x324xf32>
    %17 = arith.addf %14, %16 : vector<16x324xf32>
    %cst_8 = arith.constant 0.000000e+00 : f32
    %18 = vector.broadcast %cst_8 : f32 to vector<16x324xf32>
    %19 = arith.cmpf oge, %17, %18 : vector<16x324xf32>
    %cst_9 = arith.constant 1.000000e-01 : f32
    %20 = vector.broadcast %cst_9 : f32 to vector<16x324xf32>
    %21 = arith.mulf %17, %20 : vector<16x324xf32>
    %22 = arith.select %19, %17, %21 : vector<16x324xi1>, vector<16x324xf32>
    %23 = vector.extract_strided_slice %22 {offsets = [0, 0], sizes = [8, 324], strides = [1, 1]} : vector<16x324xf32> to vector<8x324xf32>
    %24 = vector.extract_strided_slice %22 {offsets = [8, 0], sizes = [8, 324], strides = [1, 1]} : vector<16x324xf32> to vector<8x324xf32>
    %25 = vector.broadcast %0 : vector<1x324xf32> to vector<8x324xf32>
    %26 = arith.mulf %24, %25 : vector<8x324xf32>
    %cst_10 = arith.constant 0.000000e+00 : f32
    %27 = vector.broadcast %cst_10 : f32 to vector<8x19xf32>
    %28 = tpu.concatenate %27, %26, %27 in 1 : vector<8x19xf32>, vector<8x324xf32>, vector<8x19xf32> -> vector<8x362xf32>
    %29 = vector.extract_strided_slice %28 {offsets = [0, 0], sizes = [8, 324], strides = [1, 1]} : vector<8x362xf32> to vector<8x324xf32>
    %30 = vector.extract_strided_slice %28 {offsets = [0, 1], sizes = [8, 324], strides = [1, 1]} : vector<8x362xf32> to vector<8x324xf32>
    %31 = vector.extract_strided_slice %28 {offsets = [0, 2], sizes = [8, 324], strides = [1, 1]} : vector<8x362xf32> to vector<8x324xf32>
    %32 = vector.extract_strided_slice %28 {offsets = [0, 18], sizes = [8, 324], strides = [1, 1]} : vector<8x362xf32> to vector<8x324xf32>
    %33 = vector.extract_strided_slice %28 {offsets = [0, 19], sizes = [8, 324], strides = [1, 1]} : vector<8x362xf32> to vector<8x324xf32>
    %34 = vector.extract_strided_slice %28 {offsets = [0, 20], sizes = [8, 324], strides = [1, 1]} : vector<8x362xf32> to vector<8x324xf32>
    %35 = vector.extract_strided_slice %28 {offsets = [0, 36], sizes = [8, 324], strides = [1, 1]} : vector<8x362xf32> to vector<8x324xf32>
    %36 = vector.extract_strided_slice %28 {offsets = [0, 37], sizes = [8, 324], strides = [1, 1]} : vector<8x362xf32> to vector<8x324xf32>
    %37 = vector.extract_strided_slice %28 {offsets = [0, 38], sizes = [8, 324], strides = [1, 1]} : vector<8x362xf32> to vector<8x324xf32>
    %38 = tpu.concatenate %29, %30, %31, %32, %33, %34, %35, %36, %37 in 0 : vector<8x324xf32>, vector<8x324xf32>, vector<8x324xf32>, vector<8x324xf32>, vector<8x324xf32>, vector<8x324xf32>, vector<8x324xf32>, vector<8x324xf32>, vector<8x324xf32> -> vector<72x324xf32>
    %c0_11 = arith.constant 0 : index
    %c0_12 = arith.constant 0 : index
    %39 = vector.load %arg4[%c0_11, %c0_12] : memref<12x72xf32, #tpu.memory_space<vmem>>, vector<12x72xf32>
    %cst_13 = arith.constant dense<0.000000e+00> : vector<12x324xf32>
    %40 = tpu.matmul %39, %38, %cst_13 {dimension_numbers = #tpu.dot_dimension_numbers<[1], [0], [0], [1], [0, 0, 1, 1], [], []>} : vector<12x72xf32>, vector<72x324xf32>, vector<12x324xf32> -> vector<12x324xf32>
    %c0_14 = arith.constant 0 : index
    %c0_15 = arith.constant 0 : index
    %41 = vector.load %arg7[%c0_14, %c0_15] : memref<12x1xf32, #tpu.memory_space<vmem>>, vector<12x1xf32>
    %42 = vector.broadcast %41 : vector<12x1xf32> to vector<12x324xf32>
    %43 = arith.addf %40, %42 : vector<12x324xf32>
    %cst_16 = arith.constant 0.000000e+00 : f32
    %44 = vector.broadcast %cst_16 : f32 to vector<12x324xf32>
    %45 = arith.cmpf oge, %43, %44 : vector<12x324xf32>
    %cst_17 = arith.constant 1.000000e-01 : f32
    %46 = vector.broadcast %cst_17 : f32 to vector<12x324xf32>
    %47 = arith.mulf %43, %46 : vector<12x324xf32>
    %48 = arith.select %45, %43, %47 : vector<12x324xi1>, vector<12x324xf32>
    %49 = vector.extract_strided_slice %48 {offsets = [0, 0], sizes = [8, 324], strides = [1, 1]} : vector<12x324xf32> to vector<8x324xf32>
    %50 = vector.broadcast %0 : vector<1x324xf32> to vector<8x324xf32>
    %51 = arith.mulf %49, %50 : vector<8x324xf32>
    %52 = vector.extract_strided_slice %48 {offsets = [8, 0], sizes = [4, 324], strides = [1, 1]} : vector<12x324xf32> to vector<4x324xf32>
    %cst_18 = arith.constant 0.000000e+00 : f32
    %53 = vector.broadcast %cst_18 : f32 to vector<8x19xf32>
    %54 = tpu.concatenate %53, %51, %53 in 1 : vector<8x19xf32>, vector<8x324xf32>, vector<8x19xf32> -> vector<8x362xf32>
    %55 = vector.extract_strided_slice %54 {offsets = [0, 0], sizes = [8, 324], strides = [1, 1]} : vector<8x362xf32> to vector<8x324xf32>
    %56 = vector.extract_strided_slice %54 {offsets = [0, 1], sizes = [8, 324], strides = [1, 1]} : vector<8x362xf32> to vector<8x324xf32>
    %57 = vector.extract_strided_slice %54 {offsets = [0, 2], sizes = [8, 324], strides = [1, 1]} : vector<8x362xf32> to vector<8x324xf32>
    %58 = vector.extract_strided_slice %54 {offsets = [0, 18], sizes = [8, 324], strides = [1, 1]} : vector<8x362xf32> to vector<8x324xf32>
    %59 = vector.extract_strided_slice %54 {offsets = [0, 19], sizes = [8, 324], strides = [1, 1]} : vector<8x362xf32> to vector<8x324xf32>
    %60 = vector.extract_strided_slice %54 {offsets = [0, 20], sizes = [8, 324], strides = [1, 1]} : vector<8x362xf32> to vector<8x324xf32>
    %61 = vector.extract_strided_slice %54 {offsets = [0, 36], sizes = [8, 324], strides = [1, 1]} : vector<8x362xf32> to vector<8x324xf32>
    %62 = vector.extract_strided_slice %54 {offsets = [0, 37], sizes = [8, 324], strides = [1, 1]} : vector<8x362xf32> to vector<8x324xf32>
    %63 = vector.extract_strided_slice %54 {offsets = [0, 38], sizes = [8, 324], strides = [1, 1]} : vector<8x362xf32> to vector<8x324xf32>
    %64 = tpu.concatenate %55, %56, %57, %58, %59, %60, %61, %62, %63 in 0 : vector<8x324xf32>, vector<8x324xf32>, vector<8x324xf32>, vector<8x324xf32>, vector<8x324xf32>, vector<8x324xf32>, vector<8x324xf32>, vector<8x324xf32>, vector<8x324xf32> -> vector<72x324xf32>
    %c0_19 = arith.constant 0 : index
    %c0_20 = arith.constant 0 : index
    %65 = vector.load %arg5[%c0_19, %c0_20] : memref<4x72xf32, #tpu.memory_space<vmem>>, vector<4x72xf32>
    %cst_21 = arith.constant dense<0.000000e+00> : vector<4x324xf32>
    %66 = tpu.matmul %65, %64, %cst_21 {dimension_numbers = #tpu.dot_dimension_numbers<[1], [0], [0], [1], [0, 0, 1, 1], [], []>} : vector<4x72xf32>, vector<72x324xf32>, vector<4x324xf32> -> vector<4x324xf32>
    %c0_22 = arith.constant 0 : index
    %c0_23 = arith.constant 0 : index
    %67 = vector.load %arg8[%c0_22, %c0_23] : memref<4x1xf32, #tpu.memory_space<vmem>>, vector<4x1xf32>
    %68 = vector.broadcast %67 : vector<4x1xf32> to vector<4x324xf32>
    %69 = arith.addf %66, %68 : vector<4x324xf32>
    %cst_24 = arith.constant 0.000000e+00 : f32
    %70 = vector.broadcast %cst_24 : f32 to vector<8x324xf32>
    %71 = arith.maximumf %23, %70 : vector<8x324xf32>
    %c0_25 = arith.constant 0 : index
    %c0_26 = arith.constant 0 : index
    %c0_27 = arith.constant 0 : index
    %72 = vector.load %arg9[%c0_25, %c0_26, %c0_27] : memref<1x16x324xf32, #tpu.memory_space<vmem>>, vector<1x8x324xf32>
    %73 = vector.shape_cast %72 : vector<1x8x324xf32> to vector<8x324xf32>
    %74 = vector.shape_cast %71 : vector<8x324xf32> to vector<1x8x324xf32>
    tpu.vector_store %arg9[%c0_25, %c0_26, %c0_27], %74 {strides = array<i32>} : memref<1x16x324xf32, #tpu.memory_space<vmem>>, vector<1x8x324xf32>,
    %cst_28 = arith.constant 0.000000e+00 : f32
    %75 = vector.broadcast %cst_28 : f32 to vector<4x324xf32>
    %76 = arith.maximumf %52, %75 : vector<4x324xf32>
    %c0_29 = arith.constant 0 : index
    %c8 = arith.constant 8 : index
    %c0_30 = arith.constant 0 : index
    %77 = vector.load %arg9[%c0_29, %c8, %c0_30] : memref<1x16x324xf32, #tpu.memory_space<vmem>>, vector<1x4x324xf32>
    %78 = vector.shape_cast %77 : vector<1x4x324xf32> to vector<4x324xf32>
    %79 = vector.shape_cast %76 : vector<4x324xf32> to vector<1x4x324xf32>
    tpu.vector_store %arg9[%c0_29, %c8, %c0_30], %79 {strides = array<i32>} : memref<1x16x324xf32, #tpu.memory_space<vmem>>, vector<1x4x324xf32>,
    %cst_31 = arith.constant 0.000000e+00 : f32
    %80 = vector.broadcast %cst_31 : f32 to vector<4x324xf32>
    %81 = arith.maximumf %69, %80 : vector<4x324xf32>
    %c0_32 = arith.constant 0 : index
    %c12 = arith.constant 12 : index
    %c0_33 = arith.constant 0 : index
    %82 = vector.load %arg9[%c0_32, %c12, %c0_33] : memref<1x16x324xf32, #tpu.memory_space<vmem>>, vector<1x4x324xf32>
    %83 = vector.shape_cast %82 : vector<1x4x324xf32> to vector<4x324xf32>
    %84 = vector.shape_cast %81 : vector<4x324xf32> to vector<1x4x324xf32>
    tpu.vector_store %arg9[%c0_32, %c12, %c0_33], %84 {strides = array<i32>} : memref<1x16x324xf32, #tpu.memory_space<vmem>>, vector<1x4x324xf32>,
    return
  }
  func.func @transform_0(%arg0: i32) -> (i32, i32, i32) {
    %c0_i32 = arith.constant 0 : i32
    %c0_i32_0 = arith.constant 0 : i32
    %c0_i32_1 = arith.constant 0 : i32
    return %arg0, %c0_i32, %c0_i32_0 : i32, i32, i32
  }
  func.func @transform_1(%arg0: i32) -> (i32, i32) {
    %c0_i32 = arith.constant 0 : i32
    %c0_i32_0 = arith.constant 0 : i32
    %c0_i32_1 = arith.constant 0 : i32
    return %c0_i32, %c0_i32_0 : i32, i32
  }
  func.func @transform_2(%arg0: i32) -> (i32, i32) {
    %c0_i32 = arith.constant 0 : i32
    %c0_i32_0 = arith.constant 0 : i32
    %c0_i32_1 = arith.constant 0 : i32
    return %c0_i32, %c0_i32_0 : i32, i32
  }
  func.func @transform_3(%arg0: i32) -> (i32, i32) {
    %c0_i32 = arith.constant 0 : i32
    %c0_i32_0 = arith.constant 0 : i32
    %c0_i32_1 = arith.constant 0 : i32
    return %c0_i32, %c0_i32_0 : i32, i32
  }
  func.func @transform_4(%arg0: i32) -> (i32, i32) {
    %c0_i32 = arith.constant 0 : i32
    %c0_i32_0 = arith.constant 0 : i32
    %c0_i32_1 = arith.constant 0 : i32
    return %c0_i32, %c0_i32_0 : i32, i32
  }
  func.func @transform_5(%arg0: i32) -> (i32, i32) {
    %c0_i32 = arith.constant 0 : i32
    %c0_i32_0 = arith.constant 0 : i32
    %c0_i32_1 = arith.constant 0 : i32
    return %c0_i32, %c0_i32_0 : i32, i32
  }
  func.func @transform_6(%arg0: i32) -> (i32, i32) {
    %c0_i32 = arith.constant 0 : i32
    %c0_i32_0 = arith.constant 0 : i32
    %c0_i32_1 = arith.constant 0 : i32
    return %c0_i32, %c0_i32_0 : i32, i32
  }
  func.func @transform_7(%arg0: i32) -> (i32, i32) {
    %c0_i32 = arith.constant 0 : i32
    %c0_i32_0 = arith.constant 0 : i32
    %c0_i32_1 = arith.constant 0 : i32
    return %c0_i32, %c0_i32_0 : i32, i32
  }
  func.func @transform_8(%arg0: i32) -> (i32, i32, i32) {
    %c0_i32 = arith.constant 0 : i32
    %c0_i32_0 = arith.constant 0 : i32
    %c0_i32_1 = arith.constant 0 : i32
    return %arg0, %c0_i32, %c0_i32_0 : i32, i32, i32
  }
}

</mosaic_0001>

<bundles_post_ra>
// kernel: tpu_custom_call.1
= control target key start
LH: loop header
LB: loop body
LE: loop exit
PB: predicated region body
PF: predicated region fallthrough
CT: control target
= control target key end

     0   :  { %s1894_s0 = inlined_call_operand.hbm [shape: f32[2,8,362], index: 0, kind: input, shape index: {}]   ;;  %s1895_s1 = inlined_call_operand.hbm [shape: f32[1,324], index: 1, kind: input, shape index: {}]   ;;  %s1896_s2 = inlined_call_operand.vmem [shape: f32[16,72], index: 2, kind: input, shape index: {}]   ;;  %s1897_s3 = inlined_call_operand.vmem [shape: f32[12,72], index: 3, kind: input, shape index: {}]   ;;  %s1898_s4 = inlined_call_operand.vmem [shape: f32[4,72], index: 4, kind: input, shape index: {}]   ;;  %s1899_s5 = inlined_call_operand.vmem [shape: f32[16,1], index: 5, kind: input, shape index: {}]   ;;  %s1900_s6 = inlined_call_operand.vmem [shape: f32[12,1], index: 6, kind: input, shape index: {}]   ;;  %s1901_s7 = inlined_call_operand.vmem [shape: f32[4,1], index: 7, kind: input, shape index: {}]   ;;  %s1902_s8 = inlined_call_operand.hbm [shape: f32[2,16,324], index: 8, kind: output, shape index: {}]  }
   0x1   :  { %1906 = sst [smem:[#allocation14_spill]] %s1895_s1 }
   0x2   :  { %13 = vsyncpa [#allocation3], 0 }
   0x3   :  { %15 = vsyncpa [#allocation3 + $0x1], 0 }
   0x4   :  { %16 = vsyncpa [#allocation6], 0 }
   0x5   :  { %17 = vsyncpa [#allocation4], 0 }
   0x6   :  { %19 = vsyncpa [#allocation4 + $0x1], 0  ;;  %s1501_s27 = smov 0   ;;  %s1503_s28 = smov 0  }
   0x7   :  { %s1505_s29 = smov 0   ;;  %s1507_s30 = smov 0  }
   0x8 LB: > { %1907 = sst [smem:[#allocation11_spill]] %s1437_s29  ;;  %s1522_s9 = sadd.s32 4294967295, %s1441_s30   ;;  %s1441_s30 = sphi %s1507_s30, %s1919_s30   ;;  %s1437_s29 = sphi %s1505_s29, %s1924_s29   ;;  %s1433_s28 = sphi %s1503_s28, %s1923_s28   ;;  %s1429_s27 = sphi %s1501_s27, %s1922_s27  }
   0x9   : > { %s1083_s10 = sadd.s32 4294967294, %s1441_s30   ;;  %p45_p0 = scmp.ne.s32.totalorder %s1433_s28, %s1429_s27 }
   0xa   : > { %p46_p1 = scmp.eq.s32.totalorder %s1522_s9, 0  ;;  %p216_p2 = scmp.eq.s32.totalorder %s1522_s9, 1 }
   0xb   : > { %p222_p3 = scmp.eq.s32.totalorder %s1083_s10, 1  ;;  %p1084_p5 = scmp.ge.s32.totalorder %s1441_s30, 1 }
   0xc   : > { %p1531_p4 = por %p46_p1, %p45_p0  ;;  %p229_p7 = scmp.lt.s32.totalorder %s1441_s30, 3 }
   0xd   : > { %p1536_p6 = por %p222_p3, %p45_p0  ;;  %s1910_s1 = sld [smem:[#allocation14_spill]] }
   0xe   : > { %p1544_p8 = pnand %p1084_p5, %p229_p7  ;;  %s1443_s17 = smov [#allocation5]  }
   0xf   : > { %s243_s18 = sshll.u32 %s1443_s17, 4  ;;  %s1554_s19 = sadd.s32 1, %s1441_s30   ;;  %s244_s18 = int_to_ptr.vmem [resolvable:$true] %s243_s18 }
  0x10   : > { %p1127_p10 = pneg %p1544_p8  ;;  %1912 = sst [smem:[#allocation12_spill]] %s1554_s19 }
  0x11   : > { %s32_s20 = sadd.s32 1, %s1437_s29  ;;  %s29_s21 = ssub.s32 %s1441_s30, %s1554_s19 }
  0x12   : > { %p1128_p11 = pnand %p1127_p10, %p46_p1  ;;  %p30_p12 = scmp.eq.s32.totalorder %s29_s21, 0 }
  0x13   : > { %s241_s15 = sshll.u32 %s1910_s1, 4  ;;  %p39_p13 = scmp.ne.s32.totalorder %s1437_s29, %s1433_s28  ;;  %s242_s15 = int_to_ptr.hbm [resolvable:$true] %s241_s15 }
  0x14   : > { %1130 = dma.hbm_to_vmem [thread:$0]  (!%p1128_p11), %s242_s15, 48, %s244_s18, [#allocation6]  }
  0x15   : > { %p40_p0 = scmp.eq.s32.totalorder %s1441_s30, 0  ;;  %p1140_p3 = scmp.lt.s32.totalorder %s1441_s30, 2 }
  0x16   : > { %s1564_s22 = scalar_select %p30_p12, %s1437_s29, %s32_s20  }
  0x17   : > { %p41_p5 = por %p40_p0, %p39_p13  ;;  %p1568_p7 = por %p216_p2, %p39_p13 }
  0x18   : > { %1913 = sst [smem:[#allocation13_spill]] %s1564_s22  ;;  %s272_s24 = sand.u32 1, %s1437_s29  }
  0x19   : > { %s1115_s25 = smul.u32 24, %s1441_s30  ;;  %p1577_p10 = pnand %p1140_p3, %p41_p5 }
  0x1a   : > { %s1114_s26 = smul.u32 24, %s272_s24  ;;  %s273_s21 = scalar_lea.sflag [#allocation3], %s272_s24 }
  0x1b   : > { %s281_s14 = scalar_lea.hbm %s1894_s0, %s1115_s25  ;;  %p1345_p11 = pneg %p1577_p10 }
  0x1c   : > { %s283_s17 = sshll.u32 %s281_s14, 4  ;;  %s276_s18 = scalar_lea.vmem [#allocation2], %s1114_s26  ;;  %s284_s17 = int_to_ptr.hbm [resolvable:$true] %s283_s17 }
  0x1d   : > { %s285_s20 = sshll.u32 %s276_s18, 4  ;;  %s1341_s1 = sshra.s32 %s284_s17, 4  ;;  %s286_s20 = int_to_ptr.vmem [resolvable:$true] %s285_s20  ;;  %s1342_s1 = int_to_ptr.hbm [resolvable:$true] %s1341_s1 }
  0x1e   : > { %s1343_s22 = scalar_lea.hbm %s1342_s1, 24  ;;  %s1348_s13 = scalar_lea.hbm %s1894_s0, 48 }
  0x1f   : > { %p1344_p2 = scmp.ne.s32.totalorder %s1342_s1, %s1343_s22  ;;  %p1349_p0 = scmp.lt.s32.totalorder %s1342_s1, %s1894_s0 }
  0x20   : > { %p1350_p3 = scmp.lt.s32.totalorder %s1348_s13, %s1343_s22 }
  0x21   : > { %p1346_p12 = pnand %p1345_p11, %p1344_p2 }
  0x22   : > { %p1351_p5 = por %p1350_p3, %p1349_p0 }
  0x23   : > { %p1347_p13 = pneg %p1346_p12 }
  0x25   : > { %p1352_p9 = pnand %p1351_p5, %p1347_p13 }
  0x27   : > { %1355 = shalt.err (!%p1352_p9)
}
  0x28   : > { %1134 = dma.hbm_to_vmem [thread:$0]  (!%p1577_p10), %s284_s17, 384, %s286_s20, %s273_s21  }
  0x29   : > { %294 = sbr.rel (%p1544_p8) target bundleno = 1180 (0x49c), region = 52  ;;  %s1594_s24 = sand.u32 (!%p1544_p8), 1, %s1433_s28  }
  0x2a   : > { %s1116_s26 = smul.u32 (!%p1544_p8), 24, %s1594_s24  ;;  %s297_s14 = scalar_lea.sflag (!%p1544_p8), [#allocation3], %s1594_s24 }
  0x2c   : > { %s300_s29 = scalar_lea.vmem (!%p1544_p8), [#allocation2], %s1116_s26 }
  0x2e   : > { %1416 = dma.done.wait (%p1531_p4), %s297_s14, 384  }
  0x2f   : > { %1418 = vsyncadd (%p1531_p4), %s297_s14, 4294966912 }
  0x30   : > { %1420 = dma.done.wait (%p46_p1), [#allocation6], 48  }
  0x31   : > { %1422 = vsyncadd (%p46_p1), [#allocation6], 4294967248  ;;  %v1606_v0 = vld [vmem:[%s300_s29] sm:$0xff]  ;;  %v1608_v1 = vld [vmem:[%s300_s29 + $0x10] sm:$0xff]  ;;  %s1444_s1 = smov 91   ;;  %s1445_s16 = smov 90  }
  0x32   : > { %v1193_v2 = vpack.i.bf16 %v1606_v0, %v1608_v1  ;;  %s1446_s11 = smov 92   ;;  %v1615_v3 = vld [vmem:[%s300_s29 + $0x8] sm:$0xff]  ;;  %s1447_s19 = smov 108   ;;  %vm436_vm0 = vcmask 736256   ;;  %vm424_vm1 = vcmask 744448   ;;  %vm412_vm2 = vcmask 752640  }
  0x33   : > { %s1448_s22 = smov 109   ;;  %s1449_s15 = smov 110   ;;  %vm400_vm3 = vcmask 883712   ;;  %v445_v32 = vld [vmem:[%s1899_s5 + $0x8] sm:$0xff]  ;;  %vm388_vm4 = vcmask 891904   ;;  %v1452_v33 = vmov 0  }
  0x34   : > { %1194 = vrot.lane.b32.xlu1 %v1193_v2, %s1444_s1  ;;  %1189 = vrot.lane.b32.xlu0 %v1193_v2, %s1445_s16  ;;  %s1450_s17 = smov 126   ;;  %s1451_s18 = smov 127   ;;  %vm376_vm5 = vcmask 900096   ;;  %vm364_vm6 = vcmask 1031168   ;;  %v442_v51 = vld [vmem:[%s1896_s2] sm:$0xff]  ;;  %vm456_vm7 = vcmask 588800  }
  0x35   : > { %1199 = vrot.lane.b32.xlu2 %v1193_v2, %s1446_s11  ;;  %1228 = vset.pattern.permute.xlu1 %v1452_v33  ;;  %vm352_vm8 = vcmask 1039360   ;;  %v443_v55 = vld [vmem:[%s1896_s2 + $0x8] sm:$0xff]  ;;  %v1678_v60 = vld [vmem:[#allocation5] sm:$0x7]  ;;  %s1453_s14 = smov 19   ;;  %vm569_vm12 = vcmask 154624  }
  0x36   : > { %1269 = vset.pattern.permute.xlu0 %v1452_v33  ;;  %1310 = vset.pattern.permute.xlu2 %v1452_v33  ;;  %vm576_vm13 = vcmask 711680   ;;  %vm1740_vm14 = vmneg %vm569_vm12  ;;  %s1118_s29 = smul.u32 48, %s1522_s9  ;;  %s985_s13 = scalar_lea.sflag [#allocation4], %s1594_s24 }
  0x38   : > { %s996_s25 = scalar_lea.hbm %s1902_s8, %s1118_s29 }
  0x39   : > { %s999_s9 = sshll.u32 %s996_s25, 4  ;;  %s1000_s9 = int_to_ptr.hbm [resolvable:$true] %s999_s9 }
  0x3a   : > { %s1385_s26 = sshra.s32 %s1000_s9, 4  ;;  %s1386_s26 = int_to_ptr.hbm [resolvable:$true] %s1385_s26 }
  0x3b   : > { %p1392_p9 = scmp.lt.s32.totalorder %s1386_s26, %s1902_s8 }
  0x3c   : > { %420 = vrot.lane.b32.xlu1 %v1615_v3, %s1444_s1  ;;  %432 = vrot.lane.b32.xlu0 %v1615_v3, %s1445_s16 }
  0x3d   : > { %408 = vrot.lane.b32.xlu2 %v1615_v3, %s1446_s11 }
  0x44   : > { %1204 = vrot.lane.b32.xlu0 %v1193_v2, %s1447_s19  ;;  %396 = vrot.lane.b32.xlu1 %v1615_v3, %s1447_s19 }
  0x45   : > { %1209 = vrot.lane.b32.xlu2 %v1193_v2, %s1448_s22 }
  0x4c   : > { %384 = vrot.lane.b32.xlu0 %v1615_v3, %s1448_s22  ;;  %1214 = vrot.lane.b32.xlu1 %v1193_v2, %s1449_s15 }
  0x4d   : > { %372 = vrot.lane.b32.xlu2 %v1615_v3, %s1449_s15 }
  0x54   : > { %1219 = vrot.lane.b32.xlu0 %v1193_v2, %s1450_s17  ;;  %360 = vrot.lane.b32.xlu1 %v1615_v3, %s1450_s17 }
  0x55   : > { %1224 = vrot.lane.b32.xlu2 %v1193_v2, %s1451_s18 }
  0x5c   : > { %348 = vrot.lane.b32.xlu0 %v1615_v3, %s1451_s18  ;;  %453 = vperm.xlu1 %1228, %v445_v32  }
  0x8f   : > { %v1200_v4 = vpop.permute.xlu2 %1199 }
  0x90   : > { %v1201_v10 = vunpack.i.l.bf16 %v1200_v4  ;;  %v1202_v15 = vunpack.i.h.bf16 %v1200_v4  ;;  %v551_v4 = vperm.slane %v1678_v60, 0 }
  0x97   : > { %v409_v9 = vpop.permute.xlu2 %408 }
  0x98   : > { %v413_v21 = vsel %vm412_vm2, %v1202_v15, %v409_v9  ;;  %v414_v22 = vsel %vm412_vm2, %v409_v9, %v1201_v10 }
  0x9f   : > { %v1210_v18 = vpop.permute.xlu2 %1209 }
  0xa0   : > { %v1211_v27 = vunpack.i.l.bf16 %v1210_v18  ;;  %v1212_v31 = vunpack.i.h.bf16 %v1210_v18 }
  0xa6   : > { %v1195_v5 = vpop.permute.xlu1 %1194  ;;  %v1190_v6 = vpop.permute.xlu0 %1189 }
  0xa7   : > { %v1191_v7 = vunpack.i.l.bf16 %v1190_v6  ;;  %v1196_v8 = vunpack.i.l.bf16 %v1195_v5  ;;  %v1197_v11 = vunpack.i.h.bf16 %v1195_v5  ;;  %v1192_v12 = vunpack.i.h.bf16 %v1190_v6  ;;  %v373_v30 = vpop.permute.xlu2 %372 }
  0xa8   : > { %v553_v5 = vperm.slane %v1678_v60, 2 }
  0xa9   : > { %516 = vmatpush.msra.mxu2 %v1191_v7 }
  0xab   : > { %517 = vmatpush.msra.mxu2 %v1196_v8 }
  0xad   : > { %518 = vmatpush.msra.mxu2 %v1201_v10 }
  0xae   : > { %v421_v13 = vpop.permute.xlu1 %420  ;;  %v433_v14 = vpop.permute.xlu0 %432 }
  0xaf   : > { %v437_v16 = vsel %vm436_vm0, %v1192_v12, %v433_v14  ;;  %v438_v17 = vsel %vm436_vm0, %v433_v14, %v1191_v7  ;;  %v425_v19 = vsel %vm424_vm1, %v1197_v11, %v421_v13  ;;  %v426_v20 = vsel %vm424_vm1, %v421_v13, %v1196_v8  ;;  %v1225_v42 = vpop.permute.xlu2 %1224 }
  0xb0   : > { %470 = vmatpush.msra.mxu0 %v437_v16  ;;  %493 = vmatpush.msra.mxu1 %v438_v17  ;;  %v1226_v47 = vunpack.i.l.bf16 %v1225_v42  ;;  %v1227_v50 = vunpack.i.h.bf16 %v1225_v42 }
  0xb2   : > { %471 = vmatpush.msra.mxu0 %v425_v19  ;;  %494 = vmatpush.msra.mxu1 %v426_v20 }
  0xb4   : > { %472 = vmatpush.msra.mxu0 %v413_v21  ;;  %495 = vmatpush.msra.mxu1 %v414_v22 }
  0xb6   : > { %v1205_v23 = vpop.permute.xlu0 %1204  ;;  %v397_v24 = vpop.permute.xlu1 %396 }
  0xb7   : > { %v1207_v25 = vunpack.i.h.bf16 %v1205_v23  ;;  %v1206_v26 = vunpack.i.l.bf16 %v1205_v23 }
  0xb9   : > { %519 = vmatpush.msra.mxu2 %v1206_v26  ;;  %v401_v28 = vsel %vm400_vm3, %v1207_v25, %v397_v24  ;;  %v402_v29 = vsel %vm400_vm3, %v397_v24, %v1206_v26 }
  0xba   : > { %473 = vmatpush.msra.mxu0 %v401_v28  ;;  %496 = vmatpush.msra.mxu1 %v402_v29 }
  0xbb   : > { %520 = vmatpush.msra.mxu2 %v1211_v27 }
  0xbe   : > { %v385_v34 = vpop.permute.xlu0 %384  ;;  %v1215_v35 = vpop.permute.xlu1 %1214 }
  0xbf   : > { %v1217_v36 = vunpack.i.h.bf16 %v1215_v35  ;;  %v1216_v37 = vunpack.i.l.bf16 %v1215_v35  ;;  %v389_v38 = vsel %vm388_vm4, %v1212_v31, %v385_v34  ;;  %v390_v39 = vsel %vm388_vm4, %v385_v34, %v1211_v27 }
  0xc0   : > { %474 = vmatpush.msra.mxu0 %v389_v38  ;;  %497 = vmatpush.msra.mxu1 %v390_v39 }
  0xc1   : > { %v377_v40 = vsel %vm376_vm5, %v1217_v36, %v373_v30  ;;  %v378_v41 = vsel %vm376_vm5, %v373_v30, %v1216_v37  ;;  %521 = vmatpush.msra.mxu2 %v1216_v37 }
  0xc2   : > { %475 = vmatpush.msra.mxu0 %v377_v40  ;;  %498 = vmatpush.msra.mxu1 %v378_v41 }
  0xc6   : > { %v1220_v43 = vpop.permute.xlu0 %1219  ;;  %v361_v44 = vpop.permute.xlu1 %360 }
  0xc7   : > { %v1222_v45 = vunpack.i.h.bf16 %v1220_v43  ;;  %v1221_v46 = vunpack.i.l.bf16 %v1220_v43 }
  0xc9   : > { %522 = vmatpush.msra.mxu2 %v1221_v46  ;;  %v365_v48 = vsel %vm364_vm6, %v1222_v45, %v361_v44  ;;  %v366_v49 = vsel %vm364_vm6, %v361_v44, %v1221_v46  ;;  %v670_v45 = vld [vmem:[%s1900_s6] sm:$0xff] }
  0xca   : > { %476 = vmatpush.msra.mxu0 %v365_v48  ;;  %499 = vmatpush.msra.mxu1 %v366_v49 }
  0xcb   : > { %523 = vmatpush.msra.mxu2 %v1226_v47 }
  0xcd   : > { %524 = vmatpush.msra.mxu2 %v1608_v1 }
  0xce   : > { %v349_v52 = vpop.permute.xlu0 %348  ;;  %1094 = vmatmul.msk.f32.vlgmr.msra.gmra.mxu2 %vm456_vm7, %v442_v51  ;;  %v454_v59 = vpop.permute.xlu1 %453 }
  0xcf   : > { %v353_v53 = vsel %vm352_vm8, %v1227_v50, %v349_v52  ;;  %v354_v54 = vsel %vm352_vm8, %v349_v52, %v1226_v47 }
  0xd0   : > { %477 = vmatpush.msra.mxu0 %v353_v53  ;;  %500 = vmatpush.msra.mxu1 %v354_v54 }
  0xd2   : > { %478 = vmatpush.msra.mxu0 %v1606_v0  ;;  %501 = vmatpush.msra.mxu1 %v1615_v3  ;;  %v552_v3 = vperm.slane %v1678_v60, 1 }
  0xd3   : > { %1090 = vmatmul.msk.f32.vlgmr.msra.gmra.mxu0 %vm456_vm7, %v442_v51  ;;  %1092 = vmatmul.msk.f32.vlgmr.msra.gmra.mxu1 %vm456_vm7, %v442_v51 }
  0xd6   : > { %1095 = vmatmul.msk.f32.gmra.mxu2 %vm456_vm7, %v443_v55 }
  0xdb   : > { %1091 = vmatmul.msk.f32.gmra.mxu0 %vm456_vm7, %v443_v55  ;;  %1093 = vmatmul.msk.f32.gmra.mxu1 %vm456_vm7, %v443_v55 }
 0x150   : > { %v1672_v56 = vpop.f32.mrf.mxu0  ;;  %v1674_v57 = vpop.f32.mrf.mxu1 }
 0x151   : > { %v1676_v58 = vpop.f32.mrf.mxu2 }
 0x158   : > { %v483_v61 = vpop.f32.mrf.mxu0  ;;  %v506_v62 = vpop.f32.mrf.mxu1 }
 0x159   : > { %v484_v63 = vadd.f32 %v483_v61, %v454_v59  ;;  %v507_v0 = vadd.f32 %v506_v62, %v454_v59  ;;  %v529_v1 = vpop.f32.mrf.mxu2 }
 0x15a   : > { %v530_v2 = vadd.f32 %v529_v1, %v454_v59  ;;  %v668_v1 = vld [vmem:[%s1897_s3] sm:$0xff] }
 0x15b   : > { %vm535_vm9 = vcmp.ge.f32.partialorder %v484_v63, 0.0  ;;  %v541_v6 = vmul.f32 0.1, %v484_v63  ;;  %vm536_vm10 = vcmp.ge.f32.partialorder %v507_v0, 0.0  ;;  %v542_v7 = vmul.f32 0.1, %v507_v0 }
 0x15c   : > { %vm537_vm11 = vcmp.ge.f32.partialorder %v530_v2, 0.0  ;;  %v543_v8 = vmul.f32 0.1, %v530_v2 }
 0x15d   : > { %v548_v9 = vsel %vm536_vm10, %v507_v0, %v542_v7  ;;  %v547_v10 = vsel %vm535_vm9, %v484_v63, %v541_v6 }
 0x15e   : > { %v558_v11 = vmul.f32 %v552_v3, %v548_v9  ;;  %v557_v12 = vmul.f32 %v551_v4, %v547_v10  ;;  %v549_v13 = vsel %vm537_vm11, %v530_v2, %v543_v8 }
 0x15f   : > { %v559_v14 = vmul.f32 %v553_v5, %v549_v13 }
 0x160   : > { %565 = vrot.lane.b32.xlu0 %v558_v11, %s1453_s14  ;;  %563 = vrot.lane.b32.xlu2 %v557_v12, %s1453_s14 }
 0x161   : > { %567 = vrot.lane.b32.xlu1 %v559_v14, %s1453_s14 }
 0x1ba   : > { %v1692_v15 = vpop.permute.xlu2 %563 }
 0x1bb   : > { %v575_v17 = vsel %vm569_vm12, 0.0, %v1692_v15 }
 0x1d2   : > { %v566_v16 = vpop.permute.xlu0 %565 }
 0x1d3   : > { %v1698_v18 = vsel %vm569_vm12, %v1692_v15, %v566_v16  ;;  %v568_v20 = vpop.permute.xlu1 %567 }
 0x1d4   : > { %v1239_v19 = vpack.i.bf16 %v1698_v18, %v575_v17  ;;  %v1708_v21 = vsel %vm569_vm12, %v566_v16, %v568_v20 }
 0x1d5   : > { %v577_v22 = vsel %vm576_vm13, %v1708_v21, 0.0 }
 0x1d6   : > { %1240 = vrot.lane.b32.xlu1 %v1239_v19, %s1446_s11  ;;  %1235 = vrot.lane.b32.xlu0 %v1239_v19, %s1444_s1 }
 0x1d7   : > { %1230 = vrot.lane.b32.xlu2 %v1239_v19, %s1445_s16 }
 0x1de   : > { %1255 = vrot.lane.b32.xlu1 %v1239_v19, %s1449_s15  ;;  %1245 = vrot.lane.b32.xlu0 %v1239_v19, %s1447_s19 }
 0x1df   : > { %1250 = vrot.lane.b32.xlu2 %v1239_v19, %s1448_s22 }
 0x1e6   : > { %650 = vrot.lane.b32.xlu1 %v577_v22, %s1444_s1  ;;  %1260 = vrot.lane.b32.xlu0 %v1239_v19, %s1450_s17 }
 0x1e7   : > { %1265 = vrot.lane.b32.xlu2 %v1239_v19, %s1451_s18 }
 0x1ee   : > { %617 = vrot.lane.b32.xlu1 %v577_v22, %s1448_s22  ;;  %639 = vrot.lane.b32.xlu0 %v577_v22, %s1446_s11 }
 0x1ef   : > { %661 = vrot.lane.b32.xlu2 %v577_v22, %s1445_s16 }
 0x1f6   : > { %595 = vrot.lane.b32.xlu1 %v577_v22, %s1450_s17  ;;  %606 = vrot.lane.b32.xlu0 %v577_v22, %s1449_s15 }
 0x1f7   : > { %628 = vrot.lane.b32.xlu2 %v577_v22, %s1447_s19 }
 0x1fe   : > { %674 = vperm.xlu0 %1269, %v670_v45  }
 0x1ff   : > { %584 = vrot.lane.b32.xlu2 %v577_v22, %s1451_s18 }
 0x231   : > { %v1231_v23 = vpop.permute.xlu2 %1230 }
 0x232   : > { %v1233_v24 = vunpack.i.h.bf16 %v1231_v23  ;;  %v1232_v25 = vunpack.i.l.bf16 %v1231_v23 }
 0x234   : > { %v663_v26 = vsel %vm436_vm0, %v1232_v25, %v1233_v24 }
 0x235   : > { %695 = vmatpush.msra.mxu3 %v663_v26 }
 0x239   : > { %v1251_v27 = vpop.permute.xlu2 %1250 }
 0x23a   : > { %v1253_v41 = vunpack.i.h.bf16 %v1251_v27  ;;  %v1252_v42 = vunpack.i.l.bf16 %v1251_v27 }
 0x23c   : > { %v619_v49 = vsel %vm388_vm4, %v1252_v42, %v1253_v41 }
 0x241   : > { %v1723_v28 = vpop.permute.xlu2 %1265 }
 0x242   : > { %v1268_v51 = vunpack.i.h.bf16 %v1723_v28  ;;  %v1267_v54 = vunpack.i.l.bf16 %v1723_v28 }
 0x244   : > { %v586_v63 = vsel %vm352_vm8, %v1267_v54, %v1268_v51 }
 0x248   : > { %v1241_v29 = vpop.permute.xlu1 %1240  ;;  %v1236_v30 = vpop.permute.xlu0 %1235 }
 0x249   : > { %v1243_v31 = vunpack.i.h.bf16 %v1241_v29  ;;  %v1242_v32 = vunpack.i.l.bf16 %v1241_v29  ;;  %v1238_v33 = vunpack.i.h.bf16 %v1236_v30  ;;  %v1237_v34 = vunpack.i.l.bf16 %v1236_v30  ;;  %v662_v35 = vpop.permute.xlu2 %661 }
 0x24a   : > { %741 = vmatpush.msrb.mxu1 %v662_v35  ;;  %v664_v36 = vsel %vm436_vm0, %v1233_v24, %v662_v35 }
 0x24b   : > { %718 = vmatpush.msrb.mxu0 %v664_v36  ;;  %v652_v37 = vsel %vm424_vm1, %v1237_v34, %v1238_v33  ;;  %v641_v38 = vsel %vm412_vm2, %v1242_v32, %v1243_v31 }
 0x24c   : > { %696 = vmatpush.msra.mxu3 %v652_v37 }
 0x24e   : > { %697 = vmatpush.msra.mxu3 %v641_v38  ;;  %v444_v38 = vld [vmem:[%s1899_s5] sm:$0xff] }
 0x250   : > { %v1256_v39 = vpop.permute.xlu1 %1255  ;;  %v1246_v40 = vpop.permute.xlu0 %1245 }
 0x251   : > { %v1248_v43 = vunpack.i.h.bf16 %v1246_v40  ;;  %v1247_v44 = vunpack.i.l.bf16 %v1246_v40  ;;  %v1258_v46 = vunpack.i.h.bf16 %v1256_v39  ;;  %v1257_v47 = vunpack.i.l.bf16 %v1256_v39  ;;  %v629_v2 = vpop.permute.xlu2 %628  ;;  %v671_v39 = vld [vmem:[%s1900_s6 + $0x8] sm:$0xf] }
 0x253   : > { %v630_v48 = vsel %vm400_vm3, %v1247_v44, %v1248_v43  ;;  %v608_v50 = vsel %vm376_vm5, %v1257_v47, %v1258_v46  ;;  %v631_v9 = vsel %vm400_vm3, %v1248_v43, %v629_v2 }
 0x254   : > { %698 = vmatpush.msra.mxu3 %v630_v48 }
 0x256   : > { %699 = vmatpush.msra.mxu3 %v619_v49 }
 0x258   : > { %v651_v52 = vpop.permute.xlu1 %650  ;;  %v1261_v53 = vpop.permute.xlu0 %1260  ;;  %700 = vmatpush.msra.mxu3 %v608_v50 }
 0x259   : > { %v1263_v55 = vunpack.i.h.bf16 %v1261_v53  ;;  %v1262_v59 = vunpack.i.l.bf16 %v1261_v53  ;;  %742 = vmatpush.msrb.mxu1 %v651_v52  ;;  %v653_v61 = vsel %vm424_vm1, %v1238_v33, %v651_v52  ;;  %v585_v14 = vpop.permute.xlu2 %584 }
 0x25a   : > { %719 = vmatpush.msrb.mxu0 %v653_v61  ;;  %v587_v16 = vsel %vm352_vm8, %v1268_v51, %v585_v14 }
 0x25b   : > { %v597_v62 = vsel %vm364_vm6, %v1262_v59, %v1263_v55 }
 0x25c   : > { %701 = vmatpush.msra.mxu3 %v597_v62 }
 0x25e   : > { %702 = vmatpush.msra.mxu3 %v586_v63 }
 0x260   : > { %v618_v6 = vpop.permute.xlu1 %617  ;;  %v640_v7 = vpop.permute.xlu0 %639  ;;  %1097 = vmatpush.msk.msra.mxu3 %vm1740_vm14, %v1692_v15 }
 0x261   : > { %743 = vmatpush.msrb.mxu1 %v640_v7  ;;  %v642_v8 = vsel %vm412_vm2, %v1243_v31, %v640_v7  ;;  %1098 = vmatmul.msk.f32.vlgmr.msra.gmra.mxu3 %vm456_vm7, %v668_v1  ;;  %v620_v10 = vsel %vm388_vm4, %v1253_v41, %v618_v6 }
 0x262   : > { %720 = vmatpush.msrb.mxu0 %v642_v8 }
 0x263   : > { %744 = vmatpush.msrb.mxu1 %v629_v2 }
 0x264   : > { %721 = vmatpush.msrb.mxu0 %v631_v9 }
 0x265   : > { %745 = vmatpush.msrb.mxu1 %v618_v6 }
 0x266   : > { %722 = vmatpush.msrb.mxu0 %v620_v10 }
 0x268   : > { %v596_v11 = vpop.permute.xlu1 %595  ;;  %v607_v12 = vpop.permute.xlu0 %606 }
 0x269   : > { %746 = vmatpush.msrb.mxu1 %v607_v12  ;;  %v609_v13 = vsel %vm376_vm5, %v1258_v46, %v607_v12  ;;  %v598_v15 = vsel %vm364_vm6, %v1263_v55, %v596_v11 }
 0x26a   : > { %723 = vmatpush.msrb.mxu0 %v609_v13 }
 0x26b   : > { %747 = vmatpush.msrb.mxu1 %v596_v11 }
 0x26c   : > { %724 = vmatpush.msrb.mxu0 %v598_v15 }
 0x26d   : > { %748 = vmatpush.msrb.mxu1 %v585_v14 }
 0x26e   : > { %725 = vmatpush.msrb.mxu0 %v587_v16 }
 0x26f   : > { %1102 = vmatpush.msk.msrb.mxu1 %vm576_vm13, %v1708_v21 }
 0x270   : > { %726 = vmatpush.msrb.mxu0 %v1698_v18  ;;  %1103 = vmatmul.msk.f32.vlgmr.msrb.gmra.mxu1 %vm456_vm7, %v668_v1  ;;  %v675_v17 = vpop.permute.xlu0 %674 }
 0x271   : > { %1100 = vmatmul.msk.f32.vlgmr.msrb.gmra.mxu0 %vm456_vm7, %v668_v1 }
 0x2e4   : > { %v705_v20 = vpop.f32.mrf.mxu3 }
 0x2e5   : > { %v706_v26 = vadd.f32 %v705_v20, %v675_v17 }
 0x2e7   : > { %v763_v30 = vmul.f32 0.1, %v706_v26  ;;  %vm757_vm10 = vcmp.ge.f32.partialorder %v706_v26, 0.0 }
 0x2e9   : > { %v769_v31 = vsel %vm757_vm10, %v706_v26, %v763_v30 }
 0x2ea   : > { %v775_v32 = vmul.f32 %v769_v31, %v551_v4 }
 0x2ed   : > { %v751_v19 = vpop.f32.mrf.mxu1 }
 0x2ee   : > { %v752_v22 = vadd.f32 %v751_v19, %v675_v17  ;;  %v728_v23 = vpop.f32.mrf.mxu0  ;;  %v885_v19 = vld [vmem:[%s1901_s7] sm:$0xf] }
 0x2ef   : > { %v729_v24 = vadd.f32 %v728_v23, %v675_v17 }
 0x2f0   : > { %vm759_vm15 = vcmp.ge.f32.partialorder %v752_v22, 0.0  ;;  %v765_v25 = vmul.f32 0.1, %v752_v22 }
 0x2f1   : > { %vm758_vm9 = vcmp.ge.f32.partialorder %v729_v24, 0.0  ;;  %v764_v27 = vmul.f32 0.1, %v729_v24 }
 0x2f2   : > { %v771_v28 = vsel %vm759_vm15, %v752_v22, %v765_v25 }
 0x2f3   : > { %v777_v21 = vmul.f32 %v771_v28, %v553_v5  ;;  %v770_v18 = vsel %vm758_vm9, %v729_v24, %v764_v27  ;;  %v669_v5 = vld [vmem:[%s1897_s3 + $0x8] sm:$0xf] }
 0x2f4   : > { %v776_v29 = vmul.f32 %v770_v18, %v552_v3  ;;  %1099 = vmatmul.msk.f32.gmra.mxu3 %vm456_vm7, %v669_v5  ;;  %1101 = vmatmul.msk.f32.gmra.mxu0 %vm456_vm7, %v669_v5 }
 0x2f5   : > { %785 = vrot.lane.b32.xlu2 %v777_v21, %s1453_s14  ;;  %1104 = vmatmul.msk.f32.gmra.mxu1 %vm456_vm7, %v669_v5  ;;  %v884_v5 = vld [vmem:[%s1898_s4] sm:$0xf] }
 0x2f6   : > { %783 = vrot.lane.b32.xlu1 %v776_v29, %s1453_s14 }
 0x2fe   : > { %781 = vrot.lane.b32.xlu1 %v775_v32, %s1453_s14  ;;  %s1387_s14 = scalar_lea.hbm %s1386_s26, 48 }
 0x2ff   : > { %p1388_p1 = scmp.ne.s32.totalorder %s1386_s26, %s1387_s14 }
 0x301   : > { %p1389_p4 = pnand %p1388_p1, %p1568_p7 }
 0x303   : > { %p1390_p8 = pneg %p1389_p4 }
 0x34f   : > { %v786_v35 = vpop.permute.xlu2 %785 }
 0x368   : > { %v784_v3 = vpop.permute.xlu1 %783 }
 0x369   : > { %v1793_v36 = vsel %vm569_vm12, %v784_v3, %v786_v35 }
 0x36a   : > { %v793_v37 = vsel %vm576_vm13, %v1793_v36, 0.0 }
 0x370   : > { %v1777_v33 = vpop.permute.xlu1 %781 }
 0x371   : > { %v1781_v34 = vsel %vm569_vm12, %v1777_v33, %v784_v3  ;;  %v792_v60 = vsel %vm569_vm12, 0.0, %v1777_v33 }
 0x372   : > { %v1280_v4 = vpack.i.bf16 %v1781_v34, %v792_v60  ;;  %v731_v60 = vpop.f32.mrf.mxu0 }
 0x374   : > { %1281 = vrot.lane.b32.xlu0 %v1280_v4, %s1446_s11  ;;  %1276 = vrot.lane.b32.xlu1 %v1280_v4, %s1444_s1 }
 0x375   : > { %1271 = vrot.lane.b32.xlu2 %v1280_v4, %s1445_s16 }
 0x377   : > { %v708_v3 = vpop.f32.mrf.mxu3 }
 0x37c   : > { %1296 = vrot.lane.b32.xlu0 %v1280_v4, %s1449_s15  ;;  %1291 = vrot.lane.b32.xlu1 %v1280_v4, %s1448_s22 }
 0x37d   : > { %1286 = vrot.lane.b32.xlu2 %v1280_v4, %s1447_s19 }
 0x384   : > { %877 = vrot.lane.b32.xlu0 %v793_v37, %s1445_s16  ;;  %855 = vrot.lane.b32.xlu1 %v793_v37, %s1446_s11 }
 0x385   : > { %1301 = vrot.lane.b32.xlu2 %v1280_v4, %s1450_s17 }
 0x38c   : > { %844 = vrot.lane.b32.xlu0 %v793_v37, %s1447_s19  ;;  %822 = vrot.lane.b32.xlu1 %v793_v37, %s1449_s15 }
 0x38d   : > { %866 = vrot.lane.b32.xlu2 %v793_v37, %s1444_s1  ;;  %s1391_s1 = scalar_lea.hbm %s1902_s8, 96 }
 0x38e   : > { %p1393_p10 = scmp.lt.s32.totalorder %s1391_s1, %s1387_s14 }
 0x390   : > { %p1394_p2 = por %p1393_p10, %p1392_p9 }
 0x392   : > { %p1395_p11 = pnand %p1394_p2, %p1390_p8 }
 0x394   : > { %811 = vrot.lane.b32.xlu0 %v793_v37, %s1450_s17  ;;  %1306 = vrot.lane.b32.xlu1 %v1280_v4, %s1451_s18  ;;  %v754_v4 = vpop.f32.mrf.mxu1  ;;  %s1117_s17 = smul.u32 48, %s1594_s24 }
 0x395   : > { %833 = vrot.lane.b32.xlu2 %v793_v37, %s1448_s22 }
 0x39c   : > { %448 = vperm.xlu0 %1269, %v444_v38   ;;  %679 = vperm.xlu1 %1228, %v671_v39  }
 0x39d   : > { %800 = vrot.lane.b32.xlu2 %v793_v37, %s1451_s18  ;;  %s1848_s18 = scalar_lea.vmem [#allocation7], %s1117_s17 }
 0x39e   : > { %s997_s10 = sshll.u32 %s1848_s18, 4  ;;  %s998_s10 = int_to_ptr.vmem [resolvable:$true] %s997_s10 }
 0x3a5   : > { %888 = vperm.xlu2 %1310, %v885_v19  }
 0x3cf   : > { %v1272_v40 = vpop.permute.xlu2 %1271 }
 0x3d0   : > { %v1274_v41 = vunpack.i.h.bf16 %v1272_v40  ;;  %v1273_v42 = vunpack.i.l.bf16 %v1272_v40 }
 0x3d2   : > { %v879_v43 = vsel %vm436_vm0, %v1273_v42, %v1274_v41 }
 0x3d3   : > { %901 = vmatpush.msrb.mxu2 %v879_v43 }
 0x3d7   : > { %v1287_v44 = vpop.permute.xlu2 %1286 }
 0x3d8   : > { %v1289_v51 = vunpack.i.h.bf16 %v1287_v44  ;;  %v1288_v52 = vunpack.i.l.bf16 %v1287_v44 }
 0x3da   : > { %v846_v59 = vsel %vm400_vm3, %v1288_v52, %v1289_v51 }
 0x3df   : > { %v1302_v53 = vpop.permute.xlu2 %1301 }
 0x3e0   : > { %v1304_v7 = vunpack.i.h.bf16 %v1302_v53  ;;  %v1303_v8 = vunpack.i.l.bf16 %v1302_v53 }
 0x3e2   : > { %v813_v12 = vsel %vm364_vm6, %v1303_v8, %v1304_v7 }
 0x3e6   : > { %v1282_v45 = vpop.permute.xlu0 %1281  ;;  %v1277_v46 = vpop.permute.xlu1 %1276 }
 0x3e7   : > { %v1284_v47 = vunpack.i.h.bf16 %v1282_v45  ;;  %v1283_v48 = vunpack.i.l.bf16 %v1282_v45  ;;  %v1279_v49 = vunpack.i.h.bf16 %v1277_v46  ;;  %v1278_v50 = vunpack.i.l.bf16 %v1277_v46  ;;  %v867_v10 = vpop.permute.xlu2 %866 }
 0x3e9   : > { %v868_v54 = vsel %vm424_vm1, %v1278_v50, %v1279_v49  ;;  %v857_v55 = vsel %vm412_vm2, %v1283_v48, %v1284_v47  ;;  %v869_v16 = vsel %vm424_vm1, %v1279_v49, %v867_v10 }
 0x3ea   : > { %902 = vmatpush.msrb.mxu2 %v868_v54 }
 0x3ec   : > { %903 = vmatpush.msrb.mxu2 %v857_v55 }
 0x3ee   : > { %v1297_v61 = vpop.permute.xlu0 %1296  ;;  %v1292_v62 = vpop.permute.xlu1 %1291  ;;  %904 = vmatpush.msrb.mxu2 %v846_v59 }
 0x3ef   : > { %v1299_v63 = vunpack.i.h.bf16 %v1297_v61  ;;  %v1298_v1 = vunpack.i.l.bf16 %v1297_v61  ;;  %v1294_v2 = vunpack.i.h.bf16 %v1292_v62  ;;  %v1293_v6 = vunpack.i.l.bf16 %v1292_v62  ;;  %v834_v20 = vpop.permute.xlu2 %833 }
 0x3f1   : > { %v835_v9 = vsel %vm388_vm4, %v1293_v6, %v1294_v2  ;;  %v824_v11 = vsel %vm376_vm5, %v1298_v1, %v1299_v63  ;;  %v836_v25 = vsel %vm388_vm4, %v1294_v2, %v834_v20 }
 0x3f2   : > { %905 = vmatpush.msrb.mxu2 %v835_v9 }
 0x3f4   : > { %906 = vmatpush.msrb.mxu2 %v824_v11 }
 0x3f6   : > { %v878_v13 = vpop.permute.xlu0 %877  ;;  %v856_v14 = vpop.permute.xlu1 %855  ;;  %907 = vmatpush.msrb.mxu2 %v813_v12 }
 0x3f7   : > { %941 = vmatpush.msra.mxu0 %v878_v13  ;;  %v880_v15 = vsel %vm436_vm0, %v1274_v41, %v878_v13  ;;  %v858_v17 = vsel %vm412_vm2, %v1284_v47, %v856_v14  ;;  %v801_v30 = vpop.permute.xlu2 %800  ;;  %vm959_vm0 = vcmask 556032  }
 0x3f8   : > { %921 = vmatpush.msrb.mxu3 %v880_v15 }
 0x3f9   : > { %942 = vmatpush.msra.mxu0 %v867_v10 }
 0x3fa   : > { %922 = vmatpush.msrb.mxu3 %v869_v16 }
 0x3fb   : > { %943 = vmatpush.msra.mxu0 %v856_v14 }
 0x3fc   : > { %923 = vmatpush.msrb.mxu3 %v858_v17 }
 0x3fe   : > { %v845_v22 = vpop.permute.xlu0 %844  ;;  %v823_v23 = vpop.permute.xlu1 %822 }
 0x3ff   : > { %944 = vmatpush.msra.mxu0 %v845_v22  ;;  %v847_v24 = vsel %vm400_vm3, %v1289_v51, %v845_v22  ;;  %v825_v26 = vsel %vm376_vm5, %v1299_v63, %v823_v23  ;;  %v889_v55 = vpop.permute.xlu2 %888 }
 0x400   : > { %924 = vmatpush.msrb.mxu3 %v847_v24 }
 0x401   : > { %945 = vmatpush.msra.mxu0 %v834_v20 }
 0x402   : > { %925 = vmatpush.msrb.mxu3 %v836_v25 }
 0x403   : > { %946 = vmatpush.msra.mxu0 %v823_v23 }
 0x404   : > { %926 = vmatpush.msrb.mxu3 %v825_v26 }
 0x406   : > { %v812_v27 = vpop.permute.xlu0 %811  ;;  %v1307_v28 = vpop.permute.xlu1 %1306 }
 0x407   : > { %v1309_v21 = vunpack.i.h.bf16 %v1307_v28  ;;  %v1308_v18 = vunpack.i.l.bf16 %v1307_v28  ;;  %947 = vmatpush.msra.mxu0 %v812_v27  ;;  %v814_v29 = vsel %vm364_vm6, %v1304_v7, %v812_v27 }
 0x408   : > { %927 = vmatpush.msrb.mxu3 %v814_v29 }
 0x409   : > { %948 = vmatpush.msra.mxu0 %v801_v30  ;;  %v802_v31 = vsel %vm352_vm8, %v1308_v18, %v1309_v21  ;;  %v803_v32 = vsel %vm352_vm8, %v1309_v21, %v801_v30  ;;  %vm982_vm8 = vcmask 556036  }
 0x40a   : > { %908 = vmatpush.msrb.mxu2 %v802_v31  ;;  %928 = vmatpush.msrb.mxu3 %v803_v32 }
 0x40b   : > { %1109 = vmatpush.msk.msra.mxu0 %vm576_vm13, %v1793_v36 }
 0x40c   : > { %1106 = vmatpush.msk.msrb.mxu2 %vm1740_vm14, %v1777_v33  ;;  %929 = vmatpush.msrb.mxu3 %v1781_v34 }
 0x40d   : > { %1107 = vmatmul.msk.f32.vlgmr.msrb.gmra.mxu2 %vm456_vm7, %v884_v5  ;;  %1108 = vmatmul.msk.f32.vlgmr.msrb.gmra.mxu3 %vm456_vm7, %v884_v5 }
 0x40e   : > { %v449_v35 = vpop.permute.xlu0 %448  ;;  %v680_v37 = vpop.permute.xlu1 %679  ;;  %1110 = vmatmul.msk.f32.vlgmr.msra.gmra.mxu0 %vm456_vm7, %v884_v5  ;;  %vm966_vm7 = vcmask 551936  }
 0x40f   : > { %v481_v36 = vadd.f32 %v1672_v56, %v449_v35  ;;  %v504_v38 = vadd.f32 %v1674_v57, %v449_v35  ;;  %v527_v0 = vadd.f32 %v1676_v58, %v449_v35  ;;  %v709_v33 = vadd.f32 %v708_v3, %v680_v37 }
 0x410   : > { %v732_v34 = vadd.f32 %v731_v60, %v680_v37  ;;  %v755_v39 = vadd.f32 %v754_v4, %v680_v37 }
 0x411   : > { %vm532_vm1 = vcmp.ge.f32.partialorder %v481_v36, 0.0  ;;  %vm533_vm2 = vcmp.ge.f32.partialorder %v504_v38, 0.0  ;;  %vm534_vm3 = vcmp.ge.f32.partialorder %v527_v0, 0.0  ;;  %v538_v40 = vmul.f32 0.1, %v481_v36 }
 0x412   : > { %v539_v41 = vmul.f32 0.1, %v504_v38  ;;  %v540_v42 = vmul.f32 0.1, %v527_v0  ;;  %vm760_vm4 = vcmp.ge.f32.partialorder %v709_v33, 0.0  ;;  %vm761_vm5 = vcmp.ge.f32.partialorder %v732_v34, 0.0 }
 0x413   : > { %v544_v43 = vsel %vm532_vm1, %v481_v36, %v538_v40  ;;  %vm762_vm6 = vcmp.ge.f32.partialorder %v755_v39, 0.0  ;;  %v766_v44 = vmul.f32 0.1, %v709_v33  ;;  %v767_v56 = vmul.f32 0.1, %v732_v34 }
 0x414   : > { %v545_v45 = vsel %vm533_vm2, %v504_v38, %v539_v41  ;;  %v546_v57 = vsel %vm534_vm3, %v527_v0, %v540_v42  ;;  %v954_v46 = vmax.f32 %v544_v43, 0.0  ;;  %v768_v58 = vmul.f32 0.1, %v755_v39 }
 0x415   : > { %v955_v47 = vmax.f32 %v545_v45, 0.0  ;;  %v956_v48 = vmax.f32 %v546_v57, 0.0  ;;  %v772_v49 = vsel %vm760_vm4, %v709_v33, %v766_v44  ;;  %v773_v50 = vsel %vm761_vm5, %v732_v34, %v767_v56 }
 0x416   : > { %957 = vst [vmem:[%s1848_s18] sm:$0xff] %v954_v46  ;;  %v774_v51 = vsel %vm762_vm6, %v755_v39, %v768_v58  ;;  %v961_v52 = vmax.f32 %v772_v49, 0.0  ;;  %v962_v53 = vmax.f32 %v773_v50, 0.0 }
 0x417   : > { %958 = vst [vmem:[%s1848_s18 + $0x8] sm:$0xff] %v955_v47  ;;  %v963_v54 = vmax.f32 %v774_v51, 0.0 }
 0x418   : > { %960 = vst.msk [vmem:[%s1848_s18 + $0x10] sm:$0xff] %vm959_vm0, %v956_v48 }
 0x419   : > { %964 = vst [vmem:[%s1848_s18 + $0x18] sm:$0xf] %v961_v52 }
 0x41a   : > { %965 = vst [vmem:[%s1848_s18 + $0x20] sm:$0xf] %v962_v53 }
 0x41b   : > { %967 = vst.msk [vmem:[%s1848_s18 + $0x28] sm:$0xf] %vm966_vm7, %v963_v54 }
 0x48b   : > { %v951_v59 = vpop.f32.mrf.mxu0 }
 0x48c   : > { %v952_v61 = vadd.f32 %v951_v59, %v889_v55 }
 0x48e   : > { %v970_v62 = vmax.f32 %v952_v61, 0.0 }
 0x490   : > { %v976_v63 = vrot.slane %v970_v62, 4  ;;  %v911_v1 = vpop.f32.mrf.mxu2  ;;  %v931_v2 = vpop.f32.mrf.mxu3 }
 0x491   : > { %v912_v6 = vadd.f32 %v911_v1, %v889_v55  ;;  %v932_v7 = vadd.f32 %v931_v2, %v889_v55 }
 0x492   : > { %983 = vst.msk [vmem:[%s1848_s18 + $0x28] sm:$0xf0] %vm982_vm8, %v976_v63 }
 0x493   : > { %v968_v8 = vmax.f32 %v912_v6, 0.0  ;;  %v969_v9 = vmax.f32 %v932_v7, 0.0 }
 0x495   : > { %v974_v10 = vrot.slane %v968_v8, 4  ;;  %v975_v11 = vrot.slane %v969_v9, 4 }
 0x497   : > { %980 = vst [vmem:[%s1848_s18 + $0x18] sm:$0xf0] %v974_v10 }
 0x498   : > { %981 = vst [vmem:[%s1848_s18 + $0x20] sm:$0xf0] %v975_v11 }
 0x499   : > { %1398 = shalt.err (!%p1395_p11)
}
 0x49a   : > { %s1454_s24 = smov 384   ;;  %s1455_s15 = smov 24  }
 0x49b   : > { %1125 = dma.vmem_to_hbm [thread:$0]  (%p1568_p7), %s998_s10, 768, %s1000_s9, %s985_s13, %s1454_s24, %s1454_s24, %s1455_s15  }
 0x49c PF: > { %s1014_s17 = sand.u32 1, %s1429_s27   ;;  %p1918_p12 = scmp.ge.s32.totalorder %s1441_s30, 2 }
 0x49d   : > { %s1015_s18 = scalar_lea.sflag [#allocation4], %s1014_s17 }
 0x49e   : > { %p1136_p13 = pnand %p1918_p12, %p1536_p6 }
 0x4a0   : > { %p1137_p0 = pneg %p1136_p13 }
 0x4a2   : > { %1424 = dma.done.wait (%p1137_p0), %s1015_s18, 768  }
 0x4a3   : > { %1426 = vsyncadd (%p1137_p0), %s1015_s18, 4294966528  ;;  %s1919_s30 = sld [smem:[#allocation12_spill]]  ;;  %s1922_s27 = smov %s1433_s28 }
 0x4a4   : > { %s1920_s29 = sld [smem:[#allocation11_spill]] }
 0x4a5   : > { %s1921_s20 = sld [smem:[#allocation13_spill]] }
 0x4a9   : > { %p22_p3 = scmp.ge.s32.totalorder %s1919_s30, 4  }
 0x4aa   : > { %s1923_s28 = smov %s1920_s29 }
 0x4ab   : > { %s1924_s29 = smov %s1921_s20  ;;  %24 = sbr.rel (!%p22_p3) target bundleno = 8 (0x8), region = 101 }
 0x4b0   :  { %1021 = vsyncpa [#allocation3], 1 }
 0x4b1   :  { %1023 = vsyncpa [#allocation3 + $0x1], 1 }
 0x4b2   :  { %1024 = vsyncpa [#allocation6], 1 }
 0x4b3   :  { %1025 = vsyncpa [#allocation4], 1 }
 0x4b4   :  { %1027 = vsyncpa [#allocation4 + $0x1], 1 }

</bundles_post_ra>
